<compile_context>
chip_gen: v6e
topology: v6e:2x2x1
jax: 0.10.0
libtpu: 0.0.40
codegen_flags: <defaults>
</compile_context>

<pallas_src>
import math
import functools

import jax
import jax.numpy as jnp
from jax.experimental import pallas as pl
from jax.experimental.pallas import tpu as pltpu


LANE = 128       # lane tile (last dim)
SUBLANE = 8      # f32 sublane tile (second-to-last dim)
M_TILE_CAP = 256 # rows per M tile for large batches (fills 256-wide MXU)


def _round_up(x, m):
    return ((x + m - 1) // m) * m


# ------------------------- single-buffering probe ----------------------------

_BUFFERED_SINGLE = None


def _single_buffer_supported():
    """Probe (once, eagerly) whether pl.Buffered(1) single-buffered BlockSpecs
    compile and run on this jax/libtpu.  Falls back to default double
    buffering if not."""
    global _BUFFERED_SINGLE
    if _BUFFERED_SINGLE is not None:
        return _BUFFERED_SINGLE
    try:
        spec = pl.BlockSpec((8, 128), lambda i: (0, 0),
                            pipeline_mode=pl.Buffered(1))

        def _probe(x_ref, o_ref):
            o_ref[...] = x_ref[...] + 1.0

        fn = pl.pallas_call(
            _probe,
            out_shape=jax.ShapeDtypeStruct((8, 128), jnp.float32),
            grid=(1,),
            in_specs=[spec],
            out_specs=pl.BlockSpec((8, 128), lambda i: (0, 0)),
        )
        jax.block_until_ready(fn(jnp.zeros((8, 128), jnp.float32)))
        _BUFFERED_SINGLE = True
    except Exception:
        _BUFFERED_SINGLE = False
    return _BUFFERED_SINGLE


def _const_block_spec(shape, single_buffer):
    """BlockSpec for an operand whose block never changes across the grid."""
    index_map = lambda i, _n=len(shape): (0,) * _n
    if single_buffer:
        return pl.BlockSpec(shape, index_map, pipeline_mode=pl.Buffered(1))
    return pl.BlockSpec(shape, index_map)


# ----------------------------- fused Pallas kernel ---------------------------

def _fused_mlp_kernel(*refs, n_pads, activation, matmul_dtype):
    """Fused MLP forward for one M-tile; everything resident in VMEM.

    refs = (x_ref, w0, w1, ..., wL, bias_ref, o_ref)
      x_ref    : [tm, F_pad]           matmul_dtype (already padded+cast)
      wi       : [K_pad_i, N_pad_i]    matmul_dtype (zero-padded)
      bias_ref : [1, sum(N_pad_i)]     fp32 (zero-padded, all layers fused)
      o_ref    : [tm, N_pad_last]      fp32

    The layer loop is statically unrolled (small layer count, per-layer
    shapes).  Matmuls run on the MXU with fp32 accumulation; bias add +
    activation run on VPU/EUP in fp32.  Intermediates never touch HBM.
    """
    x_ref = refs[0]
    o_ref = refs[-1]
    bias_ref = refs[-2]
    w_refs = refs[1:-2]
    num_layers = len(w_refs)

    h = x_ref[...]                       # already matmul_dtype
    off = 0
    for i in range(num_layers):
        lhs = h if h.dtype == matmul_dtype else h.astype(matmul_dtype)
        h = jnp.dot(lhs, w_refs[i][...],
                    preferred_element_type=jnp.float32)     # MXU, fp32 acc
        n_pad = n_pads[i]
        h = h + bias_ref[:, off:off + n_pad]                 # fp32 epilogue
        off += n_pad
        if i < num_layers - 1:                               # hidden layers only
            if activation == "relu":
                h = jnp.maximum(h, 0.0)
            elif activation == "sigmoid":
                h = jax.nn.sigmoid(h)
            else:
                raise ValueError("Not valid activation")
    o_ref[...] = h.astype(o_ref.dtype)


# ----------------------------- wrapper ---------------------------------------

class PallasMLP:
    """Pads/casts the parameters once, then runs a single fused pallas_call
    per forward (jitted)."""

    def __init__(self, params, activation, *, matmul_dtype=jnp.bfloat16):
        if activation not in ("relu", "sigmoid"):
            raise ValueError("Not valid activation")
        self.activation = activation
        self.matmul_dtype = jnp.dtype(matmul_dtype)
        self.target = int(params[-1][0].shape[1])
        self.F = int(params[0][0].shape[0])
        self.Fp = _round_up(self.F, LANE)
        self._single_buffer = _single_buffer_supported()

        # --- one-time pad + cast (hoisted out of the per-call path) ---------
        w_pads, bias_chunks, n_pads, w_shapes = [], [], [], []
        k_pad = self.Fp
        for (w, b) in params:
            K, N = int(w.shape[0]), int(w.shape[1])
            Np = _round_up(N, LANE)
            # Explicit zero fill (see invariant note at top of file).
            w_pad = jnp.zeros((k_pad, Np), self.matmul_dtype).at[:K, :N].set(
                w.astype(self.matmul_dtype))
            b_pad = jnp.zeros((Np,), jnp.float32).at[:N].set(
                b.astype(jnp.float32))
            w_pads.append(w_pad)
            bias_chunks.append(b_pad)
            n_pads.append(Np)
            w_shapes.append((k_pad, Np))
            k_pad = Np
        bias_cat = jnp.concatenate(bias_chunks)[None, :]     # [1, sum(Np)]

        self.n_pads = tuple(n_pads)
        self._w_shapes = tuple(w_shapes)
        self._flat = tuple(w_pads) + (bias_cat,)
        self._jitted = jax.jit(self._forward)

    # -------------------------------------------------------------------
    def _forward(self, x, *flat):
        B = x.shape[0]
        xf = x.reshape(B, -1)
        assert xf.shape[1] == self.F, (xf.shape, self.F)
        mm_dt = self.matmul_dtype
        itemsize = mm_dt.itemsize

        # --- M (batch) tiling -------------------------------------------
        Mp = _round_up(max(B, SUBLANE), SUBLANE)
        if Mp > M_TILE_CAP:
            tile_m = M_TILE_CAP
            Mp = _round_up(Mp, M_TILE_CAP)
        else:
            tile_m = Mp
        grid_m = Mp // tile_m

        x_pad = jnp.zeros((Mp, self.Fp), mm_dt).at[:B, :self.F].set(
            xf.astype(mm_dt))

        # --- specs --------------------------------------------------------
        in_specs = [pl.BlockSpec((tile_m, self.Fp), lambda i: (i, 0))]
        for arr in flat:                              # weights ... , fused bias
            in_specs.append(_const_block_spec(arr.shape, self._single_buffer))
        Np_last = self.n_pads[-1]
        out_specs = pl.BlockSpec((tile_m, Np_last), lambda i: (i, 0))

        # --- cost estimate (actual dtypes) --------------------------------
        flops = 2 * Mp * sum(kp * np_ for kp, np_ in self._w_shapes)
        transcendentals = (Mp * sum(self.n_pads[:-1])
                           if self.activation == "sigmoid" else 0)
        w_bytes = sum(int(w.size) for w in flat[:-1]) * itemsize
        b_bytes = int(flat[-1].size) * 4
        bytes_accessed = (Mp * self.Fp * itemsize + w_bytes + b_bytes
                          + Mp * Np_last * 4)

        # --- VMEM budget ---------------------------------------------------
        nbuf_const = 1 if self._single_buffer else 2
        x_tile_bytes = tile_m * self.Fp * itemsize
        o_tile_bytes = tile_m * Np_last * 4
        act_bytes = tile_m * max(self.n_pads) * 4 * 4          # fp32 intermediates headroom
        vmem_limit = (nbuf_const * (w_bytes + b_bytes)
                      + 2 * (x_tile_bytes + o_tile_bytes)
                      + act_bytes + (8 << 20))
        # Floor at the v6e/v7x scoped default, cap at v7x-safe 64 MiB.
        vmem_limit = int(max(32 << 20, min(vmem_limit, 64 << 20)))

        kernel = functools.partial(_fused_mlp_kernel,
                                   n_pads=self.n_pads,
                                   activation=self.activation,
                                   matmul_dtype=mm_dt)

        out_pad = pl.pallas_call(
            kernel,
            out_shape=jax.ShapeDtypeStruct((Mp, Np_last), jnp.float32),
            grid=(grid_m,),
            in_specs=in_specs,
            out_specs=out_specs,
            compiler_params=pltpu.CompilerParams(
                dimension_semantics=("parallel",),   # shards M tiles on v7x (B>256)
                vmem_limit_bytes=vmem_limit),
            cost_estimate=pl.CostEstimate(
                flops=flops, transcendentals=transcendentals,
                bytes_accessed=bytes_accessed),
        )(x_pad, *flat)

        # TODO(synk): if total (padded) weight bytes ever exceed ~50% of VMEM
        # (v7x: 64 MiB total), switch the weight BlockSpecs to K/N tiling with
        # an fp32 accumulator scratch and a trailing "arbitrary" reduction axis
        # instead of keeping all layers fully resident.

        return out_pad[:B, :self.target]

    # -------------------------------------------------------------------
    def __call__(self, x):
        return self._jitted(x, *self._flat)


def mlp_forward_pallas(params, x, activation, *, matmul_dtype=jnp.bfloat16):
    """One-shot convenience wrapper (builds padded params each call)."""
    return PallasMLP(params, activation, matmul_dtype=matmul_dtype)(x)


# ----------------------------- params & reference ----------------------------

def init_mlp_params(key, data_shape, hidden_size, scale_factor, num_layers,
                    target_size):
    """Deterministic init mirroring nn.Linear default
    (uniform(-1/sqrt(fan_in), 1/sqrt(fan_in)) for weight and bias).
    Weights are stored [in_features, out_features] (transpose of torch)."""
    params = []
    input_size = math.prod(data_shape)
    h = hidden_size
    for _ in range(num_layers):
        key, kw, kb = jax.random.split(key, 3)
        bound = 1.0 / math.sqrt(input_size)
        w = jax.random.uniform(kw, (input_size, h), jnp.float32, -bound, bound)
        b = jax.random.uniform(kb, (h,), jnp.float32, -bound, bound)
        params.append((w, b))
        input_size = h
        h = int(h * scale_factor)
    key, kw, kb = jax.random.split(key, 3)
    bound = 1.0 / math.sqrt(input_size)
    w = jax.random.uniform(kw, (input_size, target_size), jnp.float32, -bound, bound)
    b = jax.random.uniform(kb, (target_size,), jnp.float32, -bound, bound)
    params.append((w, b))
    return params


def mlp_reference(params, x, activation):
    """Pure-JAX fp32 reference for correctness checking."""
    B = x.shape[0]
    h = x.reshape(B, -1).astype(jnp.float32)
    for w, b in params[:-1]:
        h = h @ w + b
        if activation == "relu":
            h = jnp.maximum(h, 0.0)
        elif activation == "sigmoid":
            h = jax.nn.sigmoid(h)
        else:
            raise ValueError("Not valid activation")
    w, b = params[-1]
    return h @ w + b


# ------------------------------- main -----------------------------------------

if __name__ == "__main__":
    # Config consistent with the module's forward:
    #   data_shape = (C, H, W) = (4, 8, 8) -> input_size = 256
    #   hidden_size = 32, scale_factor = 2, num_layers = 2, target_size = 10
    data_shape = (4, 8, 8)
    hidden_size = 32
    scale_factor = 2
    num_layers = 2
    target_size = 10
    batch = 2

    key = jax.random.PRNGKey(0)
    key, kx = jax.random.split(key)
    x = jax.random.normal(kx, (batch,) + data_shape, dtype=jnp.float32)

    params = init_mlp_params(key, data_shape, hidden_size, scale_factor,
                             num_layers, target_size)

    for activation in ("relu", "sigmoid"):
        ref = mlp_reference(params, x, activation)

        # fp32-MXU path: bit-faithful to the PyTorch module.
        mlp_f32 = PallasMLP(params, activation, matmul_dtype=jnp.float32)
        out = jax.block_until_ready(mlp_f32(x))
        assert out.shape == (batch, target_size), out.shape
        assert jnp.allclose(out, ref, atol=1e-4, rtol=1e-4), (
            f"[{activation}] fp32 max abs err = {jnp.max(jnp.abs(out - ref))}")

        # Default bf16-MXU path (native fast path on v5e/v6e/v7x), fp32
        # accumulation + fp32 epilogue; looser tolerance for bf16 operands.
        mlp_bf16 = PallasMLP(params, activation)
        out_bf = jax.block_until_ready(mlp_bf16(x))
        assert out_bf.shape == (batch, target_size), out_bf.shape
        assert jnp.allclose(out_bf, ref, atol=1e-1, rtol=1e-1), (
            f"[{activation}] bf16 max abs err = {jnp.max(jnp.abs(out_bf - ref))}")

        # Second call reuses the jitted callable + pre-padded params (no
        # host-side repadding / retracing).
        jax.block_until_ready(mlp_bf16(x))

    print("KERNEL_OK")
</pallas_src>

<mosaic_0001>
module attributes {stable_mosaic.version = 11 : i64} {
  func.func @_probe(%arg0: i32, %arg1: memref<8x128xf32, #tpu.memory_space<vmem>>, %arg2: memref<8x128xf32, #tpu.memory_space<vmem>>) attributes {dimension_semantics = [#tpu.dimension_semantics<arbitrary>], iteration_bounds = array<i64: 1>, scalar_prefetch = 0 : i64, scratch_operands = 0 : i64, tpu.core_type = #tpu.core_type<tc>, window_params = [{pipeline_mode = #tpu.pipeline_mode<synchronous>, transform_indices = @transform_0, window_bounds = array<i64: 8, 128>}, {pipeline_mode = #tpu.pipeline_mode<synchronous>, transform_indices = @transform_1, window_bounds = array<i64: 8, 128>}]} {
    %c0 = arith.constant 0 : index
    %c0_0 = arith.constant 0 : index
    %0 = vector.load %arg1[%c0, %c0_0] : memref<8x128xf32, #tpu.memory_space<vmem>>, vector<8x128xf32>
    %cst = arith.constant 1.000000e+00 : f32
    %1 = vector.broadcast %cst : f32 to vector<8x128xf32>
    %2 = arith.addf %0, %1 : vector<8x128xf32>
    %c0_1 = arith.constant 0 : index
    %c0_2 = arith.constant 0 : index
    %3 = vector.load %arg2[%c0_1, %c0_2] : memref<8x128xf32, #tpu.memory_space<vmem>>, vector<8x128xf32>
    tpu.vector_store %arg2[%c0_1, %c0_2], %2 {strides = array<i32>} : memref<8x128xf32, #tpu.memory_space<vmem>>, vector<8x128xf32>,
    return
  }
  func.func @transform_0(%arg0: i32) -> (i32, i32) {
    %c0_i32 = arith.constant 0 : i32
    %c0_i32_0 = arith.constant 0 : i32
    %c0_i32_1 = arith.constant 0 : i32
    return %c0_i32, %c0_i32_0 : i32, i32
  }
  func.func @transform_1(%arg0: i32) -> (i32, i32) {
    %c0_i32 = arith.constant 0 : i32
    %c0_i32_0 = arith.constant 0 : i32
    %c0_i32_1 = arith.constant 0 : i32
    return %c0_i32, %c0_i32_0 : i32, i32
  }
}

module attributes {stable_mosaic.version = 11 : i64} {
  func.func @_fused_mlp_kernel(%arg0: i32, %arg1: memref<8x256xf32, #tpu.memory_space<vmem>>, %arg2: memref<256x128xf32, #tpu.memory_space<vmem>>, %arg3: memref<128x128xf32, #tpu.memory_space<vmem>>, %arg4: memref<128x128xf32, #tpu.memory_space<vmem>>, %arg5: memref<1x384xf32, #tpu.memory_space<vmem>>, %arg6: memref<8x128xf32, #tpu.memory_space<vmem>>) attributes {dimension_semantics = [#tpu.dimension_semantics<parallel>], iteration_bounds = array<i64: 1>, scalar_prefetch = 0 : i64, scratch_operands = 0 : i64, tpu.core_type = #tpu.core_type<tc>, window_params = [{transform_indices = @transform_0, window_bounds = array<i64: 8, 256>}, {pipeline_mode = #tpu.pipeline_mode<synchronous>, transform_indices = @transform_1, window_bounds = array<i64: 256, 128>}, {pipeline_mode = #tpu.pipeline_mode<synchronous>, transform_indices = @transform_2, window_bounds = array<i64: 128, 128>}, {pipeline_mode = #tpu.pipeline_mode<synchronous>, transform_indices = @transform_3, window_bounds = array<i64: 128, 128>}, {pipeline_mode = #tpu.pipeline_mode<synchronous>, transform_indices = @transform_4, window_bounds = array<i64: 1, 384>}, {transform_indices = @transform_5, window_bounds = array<i64: 8, 128>}]} {
    %c0 = arith.constant 0 : index
    %c0_0 = arith.constant 0 : index
    %0 = vector.load %arg1[%c0, %c0_0] : memref<8x256xf32, #tpu.memory_space<vmem>>, vector<8x256xf32>
    %c0_1 = arith.constant 0 : index
    %c0_2 = arith.constant 0 : index
    %1 = vector.load %arg2[%c0_1, %c0_2] : memref<256x128xf32, #tpu.memory_space<vmem>>, vector<256x128xf32>
    %cst = arith.constant dense<0.000000e+00> : vector<8x128xf32>
    %2 = tpu.matmul %0, %1, %cst {dimension_numbers = #tpu.dot_dimension_numbers<[1], [0], [0], [1], [0, 0, 1, 1], [], []>} : vector<8x256xf32>, vector<256x128xf32>, vector<8x128xf32> -> vector<8x128xf32>
    %c0_3 = arith.constant 0 : index
    %c0_4 = arith.constant 0 : index
    %3 = vector.load %arg5[%c0_3, %c0_4] : memref<1x384xf32, #tpu.memory_space<vmem>>, vector<1x128xf32>
    %4 = vector.broadcast %3 : vector<1x128xf32> to vector<8x128xf32>
    %5 = arith.addf %2, %4 : vector<8x128xf32>
    %cst_5 = arith.constant 0.000000e+00 : f32
    %6 = vector.broadcast %cst_5 : f32 to vector<8x128xf32>
    %7 = arith.maximumf %5, %6 : vector<8x128xf32>
    %c0_6 = arith.constant 0 : index
    %c0_7 = arith.constant 0 : index
    %8 = vector.load %arg3[%c0_6, %c0_7] : memref<128x128xf32, #tpu.memory_space<vmem>>, vector<128x128xf32>
    %cst_8 = arith.constant dense<0.000000e+00> : vector<8x128xf32>
    %9 = tpu.matmul %7, %8, %cst_8 {dimension_numbers = #tpu.dot_dimension_numbers<[1], [0], [0], [1], [0, 0, 1, 1], [], []>} : vector<8x128xf32>, vector<128x128xf32>, vector<8x128xf32> -> vector<8x128xf32>
    %c0_9 = arith.constant 0 : index
    %c128 = arith.constant 128 : index
    %10 = vector.load %arg5[%c0_9, %c128] : memref<1x384xf32, #tpu.memory_space<vmem>>, vector<1x128xf32>
    %11 = vector.broadcast %10 : vector<1x128xf32> to vector<8x128xf32>
    %12 = arith.addf %9, %11 : vector<8x128xf32>
    %cst_10 = arith.constant 0.000000e+00 : f32
    %13 = vector.broadcast %cst_10 : f32 to vector<8x128xf32>
    %14 = arith.maximumf %12, %13 : vector<8x128xf32>
    %c0_11 = arith.constant 0 : index
    %c0_12 = arith.constant 0 : index
    %15 = vector.load %arg4[%c0_11, %c0_12] : memref<128x128xf32, #tpu.memory_space<vmem>>, vector<128x128xf32>
    %cst_13 = arith.constant dense<0.000000e+00> : vector<8x128xf32>
    %16 = tpu.matmul %14, %15, %cst_13 {dimension_numbers = #tpu.dot_dimension_numbers<[1], [0], [0], [1], [0, 0, 1, 1], [], []>} : vector<8x128xf32>, vector<128x128xf32>, vector<8x128xf32> -> vector<8x128xf32>
    %c0_14 = arith.constant 0 : index
    %c256 = arith.constant 256 : index
    %17 = vector.load %arg5[%c0_14, %c256] : memref<1x384xf32, #tpu.memory_space<vmem>>, vector<1x128xf32>
    %18 = vector.broadcast %17 : vector<1x128xf32> to vector<8x128xf32>
    %19 = arith.addf %16, %18 : vector<8x128xf32>
    %c0_15 = arith.constant 0 : index
    %c0_16 = arith.constant 0 : index
    %20 = vector.load %arg6[%c0_15, %c0_16] : memref<8x128xf32, #tpu.memory_space<vmem>>, vector<8x128xf32>
    tpu.vector_store %arg6[%c0_15, %c0_16], %19 {strides = array<i32>} : memref<8x128xf32, #tpu.memory_space<vmem>>, vector<8x128xf32>,
    return
  }
  func.func @transform_0(%arg0: i32) -> (i32, i32) {
    %c0_i32 = arith.constant 0 : i32
    %c0_i32_0 = arith.constant 0 : i32
    return %arg0, %c0_i32 : i32, i32
  }
  func.func @transform_1(%arg0: i32) -> (i32, i32) {
    %c0_i32 = arith.constant 0 : i32
    %c0_i32_0 = arith.constant 0 : i32
    %c0_i32_1 = arith.constant 0 : i32
    return %c0_i32, %c0_i32_0 : i32, i32
  }
  func.func @transform_2(%arg0: i32) -> (i32, i32) {
    %c0_i32 = arith.constant 0 : i32
    %c0_i32_0 = arith.constant 0 : i32
    %c0_i32_1 = arith.constant 0 : i32
    return %c0_i32, %c0_i32_0 : i32, i32
  }
  func.func @transform_3(%arg0: i32) -> (i32, i32) {
    %c0_i32 = arith.constant 0 : i32
    %c0_i32_0 = arith.constant 0 : i32
    %c0_i32_1 = arith.constant 0 : i32
    return %c0_i32, %c0_i32_0 : i32, i32
  }
  func.func @transform_4(%arg0: i32) -> (i32, i32) {
    %c0_i32 = arith.constant 0 : i32
    %c0_i32_0 = arith.constant 0 : i32
    %c0_i32_1 = arith.constant 0 : i32
    return %c0_i32, %c0_i32_0 : i32, i32
  }
  func.func @transform_5(%arg0: i32) -> (i32, i32) {
    %c0_i32 = arith.constant 0 : i32
    %c0_i32_0 = arith.constant 0 : i32
    return %arg0, %c0_i32 : i32, i32
  }
}

</mosaic_0001>

<bundles_post_ra>
// kernel: tpu_custom_call.1
= control target key start
LH: loop header
LB: loop body
LE: loop exit
PB: predicated region body
PF: predicated region fallthrough
CT: control target
= control target key end

     0   :  { %6 = vsyncpa [#allocation3], 0  ;;  %s103_s0 = inlined_call_operand.hbm [shape: f32[8,128], index: 0, kind: input, shape index: {}]   ;;  %s104_s1 = inlined_call_operand.hbm [shape: f32[8,128], index: 1, kind: output, shape index: {}]  }
   0x1   :  { %7 = vsyncpa [#allocation4], 0  ;;  %s85_s6 = smov [#allocation2]  }
   0x2   :  { %s14_s7 = sshll.u32 %s85_s6, 4  ;;  %s15_s7 = int_to_ptr.vmem [resolvable:$true] %s14_s7 }
   0x3   :  { %s49_s8 = scalar_lea.vmem %s15_s7, 128  ;;  %p54_p1 = scmp.lt.s32.totalorder %s15_s7, %s15_s7 }
   0x4   :  { %p50_p0 = scmp.ne.s32.totalorder %s15_s7, %s49_s8  ;;  %p55_p2 = scmp.lt.s32.totalorder %s49_s8, %s49_s8 }
   0x6   :  { %p56_p3 = por %p55_p2, %p54_p1 }
   0x8   :  { %p57_p4 = pnand %p56_p3, %p50_p0 }
   0xa   :  { %60 = shalt.err (!%p57_p4)
}
   0xb   :  { %17 = dma.hbm_to_vmem [thread:$0]  %s103_s0, 128, %s15_s7, [#allocation3]  }
   0xc   :  { %81 = dma.done.wait [#allocation3], 128  }
   0xd   :  { %82 = vsyncadd [#allocation3], 4294967168  ;;  %s86_s11 = smov [#allocation5]   ;;  %v21_v0 = vld [vmem:[#allocation2] sm:$0xff] }
   0xe   :  { %s30_s12 = sshll.u32 %s86_s11, 4  ;;  %v22_v1 = vadd.f32 1.0, %v21_v0  ;;  %s31_s12 = int_to_ptr.vmem [resolvable:$true] %s30_s12 }
   0xf   :  { %s61_s13 = scalar_lea.vmem %s31_s12, 128  ;;  %p66_p6 = scmp.lt.s32.totalorder %s31_s12, %s31_s12 }
  0x10   :  { %23 = vst [vmem:[#allocation5] sm:$0xff] %v22_v1  ;;  %p62_p5 = scmp.ne.s32.totalorder %s31_s12, %s61_s13  ;;  %p67_p7 = scmp.lt.s32.totalorder %s61_s13, %s61_s13 }
  0x12   :  { %p68_p8 = por %p67_p7, %p66_p6 }
  0x14   :  { %p69_p9 = pnand %p68_p8, %p62_p5 }
  0x16   :  { %72 = shalt.err (!%p69_p9)
}
  0x17   :  { %33 = dma.vmem_to_hbm [thread:$0]  %s31_s12, 128, %s104_s1, [#allocation4]  }
  0x18   :  { %83 = dma.done.wait [#allocation4], 128  }
  0x19   :  { %84 = vsyncadd [#allocation4], 4294967168 }
  0x1a   :  { %37 = vsyncpa [#allocation3], 1 }
  0x1b   :  { %38 = vsyncpa [#allocation4], 1 }

// kernel: _forward.1
= control target key start
LH: loop header
LB: loop body
LE: loop exit
PB: predicated region body
PF: predicated region fallthrough
CT: control target
= control target key end

     0   :  { %10 = vsyncpa [#allocation3], 0  ;;  %s678_s0 = inlined_call_operand.vmem [shape: f32[8,256], index: 0, kind: input, shape index: {}]   ;;  %s679_s1 = inlined_call_operand.hbm [shape: f32[256,128], index: 1, kind: input, shape index: {}]   ;;  %s680_s2 = inlined_call_operand.hbm [shape: f32[128,128], index: 2, kind: input, shape index: {}]   ;;  %s681_s3 = inlined_call_operand.hbm [shape: f32[128,128], index: 3, kind: input, shape index: {}]   ;;  %s682_s4 = inlined_call_operand.vmem [shape: f32[1,384], index: 4, kind: input, shape index: {}]   ;;  %s683_s5 = inlined_call_operand.vmem [shape: f32[8,128], index: 5, kind: output, shape index: {}]  }
   0x1   :  { %11 = vsyncpa [#allocation5], 0  ;;  %s580_s18 = smov [#allocation4]   ;;  %s581_s20 = smov [#allocation2]  }
   0x2   :  { %s31_s19 = sshll.u32 %s580_s18, 4  ;;  %s19_s21 = sshll.u32 %s581_s20, 4  ;;  %s32_s19 = int_to_ptr.vmem [resolvable:$true] %s31_s19  ;;  %s20_s21 = int_to_ptr.vmem [resolvable:$true] %s19_s21 }
   0x3   :  { %s524_s22 = scalar_lea.vmem %s32_s19, 2048  ;;  %p529_p1 = scmp.lt.s32.totalorder %s32_s19, %s32_s19 }
   0x4   :  { %p525_p0 = scmp.ne.s32.totalorder %s32_s19, %s524_s22  ;;  %p530_p2 = scmp.lt.s32.totalorder %s524_s22, %s524_s22 }
   0x6   :  { %p531_p3 = por %p530_p2, %p529_p1 }
   0x8   :  { %p532_p4 = pnand %p531_p3, %p525_p0 }
   0xa   :  { %535 = shalt.err (!%p532_p4)
}
   0xb   :  { %s582_s23 = smov 128   ;;  %s583_s24 = smov 8  }
   0xc   :  { %37 = dma.hbm_to_vmem [thread:$0]  %s680_s2, 2048, %s32_s19, [#allocation5], %s582_s23, %s582_s23, %s583_s24  }
   0xd   :  { %s544_s27 = scalar_lea.vmem %s20_s21, 4096  ;;  %p549_p6 = scmp.lt.s32.totalorder %s20_s21, %s20_s21 }
   0xe   :  { %p545_p5 = scmp.ne.s32.totalorder %s20_s21, %s544_s27  ;;  %p550_p7 = scmp.lt.s32.totalorder %s544_s27, %s544_s27 }
  0x10   :  { %p551_p8 = por %p550_p7, %p549_p6 }
  0x12   :  { %p552_p9 = pnand %p551_p8, %p545_p5 }
  0x14   :  { %555 = shalt.err (!%p552_p9)
}
  0x15   :  { %25 = dma.hbm_to_vmem [thread:$0]  %s679_s1, 4096, %s20_s21, [#allocation3], %s582_s23, %s582_s23, %s583_s24  }
  0x16   :  { %s584_s30 = smov [#allocation6]  }
  0x17   :  { %s43_s6 = sshll.u32 %s584_s30, 4  ;;  %s44_s6 = int_to_ptr.vmem [resolvable:$true] %s43_s6 }
  0x18   :  { %s564_s7 = scalar_lea.vmem %s44_s6, 2048  ;;  %p569_p11 = scmp.lt.s32.totalorder %s44_s6, %s44_s6 }
  0x19   :  { %p565_p10 = scmp.ne.s32.totalorder %s44_s6, %s564_s7  ;;  %p570_p12 = scmp.lt.s32.totalorder %s564_s7, %s564_s7 }
  0x1b   :  { %p571_p13 = por %p570_p12, %p569_p11 }
  0x1d   :  { %p572_p0 = pnand %p571_p13, %p565_p10 }
  0x1f   :  { %575 = shalt.err (!%p572_p0)
}
  0x20   :  { %49 = dma.hbm_to_vmem [thread:$0]  %s681_s3, 2048, %s44_s6, [#allocation5], %s582_s23, %s582_s23, %s583_s24  }
  0x21   :  { %576 = dma.done.wait [#allocation3], 4096  }
  0x22   :  { %577 = vsyncadd [#allocation3], 4294963200 }
  0x23   :  { %578 = dma.done.wait [#allocation5], 4096  }
  0x24   :  { %579 = vsyncadd [#allocation5], 4294963200  ;;  %v585_v0 = vmov 0.0   ;;  %v94_v1 = vld [vmem:[#allocation2 + $0xf8] sm:$0xff]  ;;  %v93_v3 = vld [vmem:[#allocation2 + $0xf0] sm:$0xff]  ;;  %vm586_vm0 = vmmov 0  }
  0x25   :  { %439 = vmatprep.subr.mxu1 %v585_v0  ;;  %v78_v2 = vld [vmem:[#allocation2 + $0x78] sm:$0xff]  ;;  %370 = vmatprep.subr.mxu0 %v94_v1  ;;  %v77_v4 = vld [vmem:[#allocation2 + $0x70] sm:$0xff]  ;;  %v92_v5 = vld [vmem:[#allocation2 + $0xe8] sm:$0xff] }
  0x26   :  { %371 = vmatpush3.msra.mxu0 %v78_v2  ;;  %v76_v6 = vld [vmem:[#allocation2 + $0x68] sm:$0xff]  ;;  %v91_v7 = vld [vmem:[#allocation2 + $0xe0] sm:$0xff]  ;;  %v90_v9 = vld [vmem:[#allocation2 + $0xd8] sm:$0xff]  ;;  %471 = vmatprep.mubr.msk.f32.mxu1 %vm586_vm0, %v585_v0 }
  0x27   :  { %372 = vmatprep.subr.mxu0 %v93_v3  ;;  %v75_v8 = vld [vmem:[#allocation2 + $0x60] sm:$0xff]  ;;  %v74_v10 = vld [vmem:[#allocation2 + $0x58] sm:$0xff]  ;;  %v89_v11 = vld [vmem:[#allocation2 + $0xd0] sm:$0xff] }
  0x28   :  { %373 = vmatpush3.msra.mxu0 %v77_v4  ;;  %v73_v12 = vld [vmem:[#allocation2 + $0x50] sm:$0xff]  ;;  %v88_v13 = vld [vmem:[#allocation2 + $0xc8] sm:$0xff]  ;;  %v188_v16 = vld [vmem:[#allocation4 + $0x78] sm:$0xff] }
  0x29   :  { %374 = vmatprep.subr.mxu0 %v92_v5  ;;  %v62_v14 = vld [vmem:[%s678_s0 + $0x8] sm:$0xff]  ;;  %v187_v17 = vld [vmem:[#allocation4 + $0x70] sm:$0xff]  ;;  %v87_v18 = vld [vmem:[#allocation2 + $0xc0] sm:$0xff]  ;;  %440 = vmatpush3.msra.mxu1 %v188_v16 }
  0x2a   :  { %375 = vmatpush3.msra.mxu0 %v76_v6  ;;  %v72_v15 = vld [vmem:[#allocation2 + $0x48] sm:$0xff]  ;;  %166 = vmatprep.mubr.f32.mxu0 %v62_v14  ;;  %v71_v19 = vld [vmem:[#allocation2 + $0x40] sm:$0xff]  ;;  %v86_v21 = vld [vmem:[#allocation2 + $0xb8] sm:$0xff] }
  0x2b   :  { %376 = vmatprep.subr.mxu0 %v91_v7  ;;  %441 = vmatprep.subr.mxu1 %v585_v0  ;;  %v186_v20 = vld [vmem:[#allocation4 + $0x68] sm:$0xff]  ;;  %v70_v22 = vld [vmem:[#allocation2 + $0x38] sm:$0xff]  ;;  %v185_v23 = vld [vmem:[#allocation4 + $0x60] sm:$0xff] }
  0x2c   :  { %377 = vmatpush3.msra.mxu0 %v75_v8  ;;  %442 = vmatpush3.msra.mxu1 %v187_v17  ;;  %v85_v24 = vld [vmem:[#allocation2 + $0xb0] sm:$0xff]  ;;  %v184_v26 = vld [vmem:[#allocation4 + $0x58] sm:$0xff]  ;;  %v84_v27 = vld [vmem:[#allocation2 + $0xa8] sm:$0xff] }
  0x2d   :  { %378 = vmatprep.subr.mxu0 %v90_v9  ;;  %443 = vmatprep.subr.mxu1 %v585_v0  ;;  %v69_v25 = vld [vmem:[#allocation2 + $0x30] sm:$0xff]  ;;  %v68_v28 = vld [vmem:[#allocation2 + $0x28] sm:$0xff]  ;;  %v83_v30 = vld [vmem:[#allocation2 + $0xa0] sm:$0xff] }
  0x2e   :  { %379 = vmatpush3.msra.mxu0 %v74_v10  ;;  %444 = vmatpush3.msra.mxu1 %v186_v20  ;;  %v183_v29 = vld [vmem:[#allocation4 + $0x50] sm:$0xff]  ;;  %v67_v31 = vld [vmem:[#allocation2 + $0x20] sm:$0xff]  ;;  %v182_v32 = vld [vmem:[#allocation4 + $0x48] sm:$0xff] }
  0x2f   :  { %380 = vmatprep.subr.mxu0 %v89_v11  ;;  %445 = vmatprep.subr.mxu1 %v585_v0  ;;  %v82_v33 = vld [vmem:[#allocation2 + $0x98] sm:$0xff]  ;;  %v181_v35 = vld [vmem:[#allocation4 + $0x40] sm:$0xff]  ;;  %v81_v36 = vld [vmem:[#allocation2 + $0x90] sm:$0xff] }
  0x30   :  { %381 = vmatpush3.msra.mxu0 %v73_v12  ;;  %446 = vmatpush3.msra.mxu1 %v185_v23  ;;  %v66_v34 = vld [vmem:[#allocation2 + $0x18] sm:$0xff]  ;;  %v65_v37 = vld [vmem:[#allocation2 + $0x10] sm:$0xff]  ;;  %v80_v39 = vld [vmem:[#allocation2 + $0x88] sm:$0xff] }
  0x31   :  { %382 = vmatprep.subr.mxu0 %v88_v13  ;;  %447 = vmatprep.subr.mxu1 %v585_v0  ;;  %v180_v38 = vld [vmem:[#allocation4 + $0x38] sm:$0xff]  ;;  %v64_v40 = vld [vmem:[#allocation2 + $0x8] sm:$0xff]  ;;  %v179_v41 = vld [vmem:[#allocation4 + $0x30] sm:$0xff] }
  0x32   :  { %383 = vmatpush3.msra.mxu0 %v72_v15  ;;  %448 = vmatpush3.msra.mxu1 %v184_v26  ;;  %v79_v42 = vld [vmem:[#allocation2 + $0x80] sm:$0xff]  ;;  %v178_v44 = vld [vmem:[#allocation4 + $0x28] sm:$0xff]  ;;  %v176_v47 = vld [vmem:[#allocation4 + $0x18] sm:$0xff] }
  0x33   :  { %384 = vmatprep.subr.mxu0 %v87_v18  ;;  %449 = vmatprep.subr.mxu1 %v585_v0  ;;  %v63_v43 = vld [vmem:[#allocation2] sm:$0xff]  ;;  %v175_v48 = vld [vmem:[#allocation4 + $0x10] sm:$0xff]  ;;  %v174_v49 = vld [vmem:[#allocation4 + $0x8] sm:$0xff] }
  0x34   :  { %385 = vmatpush3.msra.mxu0 %v71_v19  ;;  %450 = vmatpush3.msra.mxu1 %v183_v29  ;;  %v61_v45 = vld [vmem:[%s678_s0] sm:$0xff]  ;;  %v282_v51 = vld [vmem:[#allocation6 + $0x78] sm:$0xff]  ;;  %v281_v52 = vld [vmem:[#allocation6 + $0x70] sm:$0xff] }
  0x35   :  { %386 = vmatprep.subr.mxu0 %v86_v21  ;;  %451 = vmatprep.subr.mxu1 %v585_v0  ;;  %v177_v46 = vld [vmem:[#allocation4 + $0x20] sm:$0xff]  ;;  %v280_v53 = vld [vmem:[#allocation6 + $0x68] sm:$0xff]  ;;  %v278_v55 = vld [vmem:[#allocation6 + $0x58] sm:$0xff] }
  0x36   :  { %387 = vmatpush3.msra.mxu0 %v70_v22  ;;  %452 = vmatpush3.msra.mxu1 %v182_v32  ;;  %v173_v50 = vld [vmem:[#allocation4] sm:$0xff]  ;;  %v277_v56 = vld [vmem:[#allocation6 + $0x50] sm:$0xff]  ;;  %v276_v57 = vld [vmem:[#allocation6 + $0x48] sm:$0xff] }
  0x37   :  { %388 = vmatprep.subr.mxu0 %v85_v24  ;;  %453 = vmatprep.subr.mxu1 %v585_v0  ;;  %v279_v54 = vld [vmem:[#allocation6 + $0x60] sm:$0xff]  ;;  %v274_v59 = vld [vmem:[#allocation6 + $0x38] sm:$0xff]  ;;  %v273_v60 = vld [vmem:[#allocation6 + $0x30] sm:$0xff] }
  0x38   :  { %389 = vmatpush3.msra.mxu0 %v69_v25  ;;  %454 = vmatpush3.msra.mxu1 %v181_v35  ;;  %v275_v58 = vld [vmem:[#allocation6 + $0x40] sm:$0xff]  ;;  %v272_v61 = vld [vmem:[#allocation6 + $0x28] sm:$0xff]  ;;  %v270_v63 = vld [vmem:[#allocation6 + $0x18] sm:$0xff] }
  0x39   :  { %390 = vmatprep.subr.mxu0 %v84_v27  ;;  %455 = vmatprep.subr.mxu1 %v585_v0  ;;  %v271_v62 = vld [vmem:[#allocation6 + $0x20] sm:$0xff]  ;;  %v269_v7 = vld [vmem:[#allocation6 + $0x10] sm:$0xff]  ;;  %v268_v8 = vld [vmem:[#allocation6 + $0x8] sm:$0xff] }
  0x3a   :  { %391 = vmatpush3.msra.mxu0 %v68_v28  ;;  %456 = vmatpush3.msra.mxu1 %v180_v38  ;;  %v367_v2 = vld [vmem:[%s682_s4] ss:$0 sm:$0xff]  ;;  %v368_v10 = vld [vmem:[%s682_s4 + $0x1] ss:$0 sm:$0xff]  ;;  %v369_v15 = vld [vmem:[%s682_s4 + $0x2] ss:$0 sm:$0xff] }
  0x3b   :  { %392 = vmatprep.subr.mxu0 %v83_v30  ;;  %457 = vmatprep.subr.mxu1 %v585_v0  ;;  %v267_v9 = vld [vmem:[#allocation6] sm:$0xff] }
  0x3c   :  { %393 = vmatpush3.msra.mxu0 %v67_v31  ;;  %458 = vmatpush3.msra.mxu1 %v179_v41 }
  0x3d   :  { %394 = vmatprep.subr.mxu0 %v82_v33  ;;  %459 = vmatprep.subr.mxu1 %v585_v0 }
  0x3e   :  { %395 = vmatpush3.msra.mxu0 %v66_v34  ;;  %460 = vmatpush3.msra.mxu1 %v178_v44 }
  0x3f   :  { %396 = vmatprep.subr.mxu0 %v81_v36  ;;  %461 = vmatprep.subr.mxu1 %v585_v0 }
  0x40   :  { %397 = vmatpush3.msra.mxu0 %v65_v37  ;;  %462 = vmatpush3.msra.mxu1 %v177_v46 }
  0x41   :  { %398 = vmatprep.subr.mxu0 %v80_v39  ;;  %463 = vmatprep.subr.mxu1 %v585_v0 }
  0x42   :  { %399 = vmatpush3.msra.mxu0 %v64_v40  ;;  %464 = vmatpush3.msra.mxu1 %v176_v47 }
  0x43   :  { %400 = vmatprep.subr.mxu0 %v79_v42  ;;  %465 = vmatprep.subr.mxu1 %v585_v0 }
  0x44   :  { %401 = vmatpush3.msra.mxu0 %v63_v43  ;;  %466 = vmatpush3.msra.mxu1 %v175_v48 }
  0x45   :  { %167 = vmatmul.mubr.f32.vlgmr.msra.gmra.mxu0 %v61_v45  ;;  %474 = vmatprep.subr.mxu0 %v585_v0 }
  0x46   :  { %467 = vmatprep.subr.mxu1 %v585_v0  ;;  %506 = vmatprep.mubr.msk.f32.mxu0 %vm586_vm0, %v585_v0 }
  0x47   :  { %468 = vmatpush3.msra.mxu1 %v174_v49  ;;  %475 = vmatpush3.msra.mxu0 %v282_v51 }
  0x48   :  { %469 = vmatprep.subr.mxu1 %v585_v0  ;;  %476 = vmatprep.subr.mxu0 %v585_v0 }
  0x49   :  { %470 = vmatpush3.msra.mxu1 %v173_v50  ;;  %477 = vmatpush3.msra.mxu0 %v281_v52 }
  0x4a   :  { %478 = vmatprep.subr.mxu0 %v585_v0 }
  0x4b   :  { %479 = vmatpush3.msra.mxu0 %v280_v53 }
  0x4c   :  { %480 = vmatprep.subr.mxu0 %v585_v0 }
  0x4d   :  { %481 = vmatpush3.msra.mxu0 %v279_v54 }
  0x4e   :  { %482 = vmatprep.subr.mxu0 %v585_v0 }
  0x4f   :  { %483 = vmatpush3.msra.mxu0 %v278_v55 }
  0x50   :  { %484 = vmatprep.subr.mxu0 %v585_v0 }
  0x51   :  { %485 = vmatpush3.msra.mxu0 %v277_v56 }
  0x52   :  { %486 = vmatprep.subr.mxu0 %v585_v0 }
  0x53   :  { %487 = vmatpush3.msra.mxu0 %v276_v57 }
  0x54   :  { %488 = vmatprep.subr.mxu0 %v585_v0 }
  0x55   :  { %489 = vmatpush3.msra.mxu0 %v275_v58 }
  0x56   :  { %490 = vmatprep.subr.mxu0 %v585_v0 }
  0x57   :  { %491 = vmatpush3.msra.mxu0 %v274_v59 }
  0x58   :  { %492 = vmatprep.subr.mxu0 %v585_v0 }
  0x59   :  { %493 = vmatpush3.msra.mxu0 %v273_v60 }
  0x5a   :  { %494 = vmatprep.subr.mxu0 %v585_v0 }
  0x5b   :  { %495 = vmatpush3.msra.mxu0 %v272_v61 }
  0x5c   :  { %496 = vmatprep.subr.mxu0 %v585_v0 }
  0x5d   :  { %497 = vmatpush3.msra.mxu0 %v271_v62 }
  0x5e   :  { %498 = vmatprep.subr.mxu0 %v585_v0 }
  0x5f   :  { %499 = vmatpush3.msra.mxu0 %v270_v63 }
  0x60   :  { %500 = vmatprep.subr.mxu0 %v585_v0 }
  0x61   :  { %501 = vmatpush3.msra.mxu0 %v269_v7 }
  0x62   :  { %502 = vmatprep.subr.mxu0 %v585_v0 }
  0x63   :  { %503 = vmatpush3.msra.mxu0 %v268_v8 }
  0x64   :  { %504 = vmatprep.subr.mxu0 %v585_v0 }
  0x65   :  { %505 = vmatpush3.msra.mxu0 %v267_v9 }
 0x105   :  { %v402_v1 = vpop.f32.mrf.mxu0 }
 0x107   :  { %v403_v3 = vpop.f32.mrf.mxu0 }
 0x108   :  { %v404_v4 = vadd.f32 %v403_v3, %v402_v1 }
 0x10a   :  { %v169_v5 = vadd.f32 %v404_v4, %v367_v2 }
 0x10c   :  { %v172_v6 = vmax.f32 %v169_v5, 0.0 }
 0x10e   :  { %472 = vmatmul.mubr.f32.vlgmr.msra.gmra.mxu1 %v172_v6 }
 0x1ce   :  { %v262_v11 = vpop.f32.mrf.mxu1 }
 0x1cf   :  { %v263_v12 = vadd.f32 %v368_v10, %v262_v11 }
 0x1d0   :  { %v473_v13 = vpop.f32.mrf.mxu1 }
 0x1d1   :  { %v266_v14 = vmax.f32 %v263_v12, 0.0 }
 0x1d3   :  { %507 = vmatmul.mubr.f32.vlgmr.msra.gmra.mxu0 %v266_v14 }
 0x293   :  { %v356_v16 = vpop.f32.mrf.mxu0 }
 0x294   :  { %v357_v17 = vadd.f32 %v369_v15, %v356_v16 }
 0x295   :  { %v508_v18 = vpop.f32.mrf.mxu0 }
 0x296   :  { %360 = vst [vmem:[%s683_s5] sm:$0xff] %v357_v17 }
 0x297   :  { %365 = vsyncpa [#allocation3], 1 }
 0x298   :  { %366 = vsyncpa [#allocation5], 1 }

</bundles_post_ra>
